<compile_context>
chip_gen: v7x
topology: tpu7x:2x2x1
jax: 0.10.0
libtpu: 0.0.40
codegen_flags: <defaults>
</compile_context>

<pallas_src>
import jax
import jax.numpy as jnp
from jax.experimental import pallas as pl
from jax.experimental.pallas import tpu as pltpu

NUM_LAYERS = 12


def _round_up(x, m):
    return ((x + m - 1) // m) * m


def _weighted_sum_kernel(w_ref, x_ref, o_ref):
    # w_ref: SMEM f32[12]          -- per-layer weights with gamma pre-folded
    # x_ref: VMEM [12, TILE_R, H]  -- activations in their native dtype
    # o_ref: VMEM [TILE_R, H]
    acc = x_ref[0].astype(jnp.float32) * w_ref[0]
    # Static unroll over the 12 layers: pure VPU multiply-adds on one live
    # accumulator; each x_ref[l] is read exactly once.
    for l in range(1, NUM_LAYERS):
        acc = acc + x_ref[l].astype(jnp.float32) * w_ref[l]
    o_ref[...] = acc.astype(o_ref.dtype)


def bert_weighted_embed(encoded_layers, bert_weights, bert_gamma, *, max_tile_r=512):
    """encoded_layers: [12, B, S, H]; bert_weights: [12, 1]; bert_gamma: [1, 1].

    Returns [B, S, H] = gamma * sum_l(w_l * layer_l), matching the PyTorch
    forward in 'weighted' mode.  Accepts f32 or bf16 activations (output keeps
    the input dtype; accumulation is f32).
    """
    L, B, S, H = encoded_layers.shape
    assert L == NUM_LAYERS
    R = B * S

    # Keep activations in native dtype: no wrapper-side astype pass over HBM.
    x = encoded_layers.reshape(L, R, H)
    # Fold gamma into the per-layer weights (free scalar math in the wrapper).
    w = (bert_weights.reshape(L).astype(jnp.float32)
         * bert_gamma.reshape(()).astype(jnp.float32))

    in_itemsize = jnp.dtype(x.dtype).itemsize
    out_dtype = encoded_layers.dtype
    out_itemsize = jnp.dtype(out_dtype).itemsize

    # ---- tile-size selection (multiple of 8 sublanes; H stays full-width) ----
    tile_r = _round_up(min(max_tile_r, _round_up(R, 8)), 8)

    def _footprint(t):
        # double-buffered input block + double-buffered output block
        return 2 * (L * t * H * in_itemsize + t * H * out_itemsize)

    # Stay under a v7x-safe (64 MiB physical VMEM) budget; v5e/v6e have more.
    budget = 48 << 20
    while tile_r > 8 and _footprint(tile_r) > budget:
        tile_r = _round_up(tile_r // 2, 8)

    # Pad ragged tail rows with zeros (they contribute 0 and are sliced off).
    r_pad = _round_up(R, tile_r)
    if r_pad != R:
        x = jnp.pad(x, ((0, 0), (0, r_pad - R), (0, 0)))
    grid = (r_pad // tile_r,)

    vmem_limit = int(min(max(_footprint(tile_r) + (4 << 20), 32 << 20), 60 << 20))

    cost = pl.CostEstimate(
        flops=2 * L * r_pad * H,
        transcendentals=0,
        bytes_accessed=L * r_pad * H * in_itemsize + r_pad * H * out_itemsize,
    )

    out = pl.pallas_call(
        _weighted_sum_kernel,
        out_shape=jax.ShapeDtypeStruct((r_pad, H), out_dtype),
        grid=grid,
        in_specs=[
            pl.BlockSpec(memory_space=pltpu.MemorySpace.SMEM),      # w (12 scalars)
            pl.BlockSpec((L, tile_r, H), lambda i: (0, i, 0)),      # x row-tile
        ],
        out_specs=pl.BlockSpec((tile_r, H), lambda i: (i, 0)),
        compiler_params=pltpu.CompilerParams(
            dimension_semantics=("parallel",),   # independent row tiles (v7x 2 TCs)
            vmem_limit_bytes=vmem_limit,
        ),
        cost_estimate=cost,
    )(w, x)

    return out[:R].reshape(B, S, H)


def _reference(encoded_layers, bert_weights, bert_gamma):
    # Pure-JAX reference of the PyTorch forward ('weighted' mode).
    stacked = (encoded_layers.astype(jnp.float32)
               * bert_weights.astype(jnp.float32)[:, None, None, :])
    return bert_gamma.reshape(()).astype(jnp.float32) * jnp.sum(stacked, axis=0)


if __name__ == "__main__":
    key = jax.random.PRNGKey(0)
    k_x, k_w, k_g = jax.random.split(key, 3)

    # Small shapes consistent with the forward: 12 encoder layers, batch=2,
    # seq=8, hidden=32.
    B, S, H = 2, 8, 32
    encoded_layers = jax.random.normal(k_x, (NUM_LAYERS, B, S, H), jnp.float32)

    # Deterministic parameter init mirroring torch.nn.init.xavier_normal:
    #   bert_weights: (12, 1) -> fan_in=1, fan_out=12 -> std = sqrt(2/13)
    #   bert_gamma:   (1, 1)  -> fan_in=1, fan_out=1  -> std = 1.0
    bert_weights = jax.random.normal(k_w, (NUM_LAYERS, 1), jnp.float32) * jnp.sqrt(
        2.0 / (NUM_LAYERS + 1))
    bert_gamma = jax.random.normal(k_g, (1, 1), jnp.float32) * 1.0

    out = bert_weighted_embed(encoded_layers, bert_weights, bert_gamma)
    out = jax.block_until_ready(out)

    ref = _reference(encoded_layers, bert_weights, bert_gamma)
    assert out.shape == (B, S, H), out.shape
    assert jnp.allclose(out, ref, atol=1e-5, rtol=1e-5), "mismatch vs reference"

    print("KERNEL_OK")
</pallas_src>

<mosaic_0001>
module attributes {stable_mosaic.version = 11 : i64} {
  func.func @_weighted_sum_kernel(%arg0: i32, %arg1: memref<12xf32, #tpu.memory_space<smem>>, %arg2: memref<12x16x32xf32, #tpu.memory_space<vmem>>, %arg3: memref<16x32xf32, #tpu.memory_space<vmem>>) attributes {dimension_semantics = [#tpu.dimension_semantics<parallel>], iteration_bounds = array<i64: 1>, scalar_prefetch = 0 : i64, scratch_operands = 0 : i64, tpu.core_type = #tpu.core_type<tc>, window_params = [{transform_indices = @transform_0, window_bounds = array<i64: 12>}, {transform_indices = @transform_1, window_bounds = array<i64: 12, 16, 32>}, {transform_indices = @transform_2, window_bounds = array<i64: 16, 32>}]} {
    %c0 = arith.constant 0 : index
    %c0_0 = arith.constant 0 : index
    %c0_1 = arith.constant 0 : index
    %0 = vector.load %arg2[%c0, %c0_0, %c0_1] : memref<12x16x32xf32, #tpu.memory_space<vmem>>, vector<1x16x32xf32>
    %1 = vector.shape_cast %0 : vector<1x16x32xf32> to vector<16x32xf32>
    %c0_2 = arith.constant 0 : index
    %2 = memref.load %arg1[%c0_2] : memref<12xf32, #tpu.memory_space<smem>>
    %3 = vector.broadcast %2 : f32 to vector<16x32xf32>
    %4 = arith.mulf %1, %3 : vector<16x32xf32>
    %c1 = arith.constant 1 : index
    %c0_3 = arith.constant 0 : index
    %c0_4 = arith.constant 0 : index
    %5 = vector.load %arg2[%c1, %c0_3, %c0_4] : memref<12x16x32xf32, #tpu.memory_space<vmem>>, vector<1x16x32xf32>
    %6 = vector.shape_cast %5 : vector<1x16x32xf32> to vector<16x32xf32>
    %c1_5 = arith.constant 1 : index
    %7 = memref.load %arg1[%c1_5] : memref<12xf32, #tpu.memory_space<smem>>
    %8 = vector.broadcast %7 : f32 to vector<16x32xf32>
    %9 = arith.mulf %6, %8 : vector<16x32xf32>
    %10 = arith.addf %4, %9 : vector<16x32xf32>
    %c2 = arith.constant 2 : index
    %c0_6 = arith.constant 0 : index
    %c0_7 = arith.constant 0 : index
    %11 = vector.load %arg2[%c2, %c0_6, %c0_7] : memref<12x16x32xf32, #tpu.memory_space<vmem>>, vector<1x16x32xf32>
    %12 = vector.shape_cast %11 : vector<1x16x32xf32> to vector<16x32xf32>
    %c2_8 = arith.constant 2 : index
    %13 = memref.load %arg1[%c2_8] : memref<12xf32, #tpu.memory_space<smem>>
    %14 = vector.broadcast %13 : f32 to vector<16x32xf32>
    %15 = arith.mulf %12, %14 : vector<16x32xf32>
    %16 = arith.addf %10, %15 : vector<16x32xf32>
    %c3 = arith.constant 3 : index
    %c0_9 = arith.constant 0 : index
    %c0_10 = arith.constant 0 : index
    %17 = vector.load %arg2[%c3, %c0_9, %c0_10] : memref<12x16x32xf32, #tpu.memory_space<vmem>>, vector<1x16x32xf32>
    %18 = vector.shape_cast %17 : vector<1x16x32xf32> to vector<16x32xf32>
    %c3_11 = arith.constant 3 : index
    %19 = memref.load %arg1[%c3_11] : memref<12xf32, #tpu.memory_space<smem>>
    %20 = vector.broadcast %19 : f32 to vector<16x32xf32>
    %21 = arith.mulf %18, %20 : vector<16x32xf32>
    %22 = arith.addf %16, %21 : vector<16x32xf32>
    %c4 = arith.constant 4 : index
    %c0_12 = arith.constant 0 : index
    %c0_13 = arith.constant 0 : index
    %23 = vector.load %arg2[%c4, %c0_12, %c0_13] : memref<12x16x32xf32, #tpu.memory_space<vmem>>, vector<1x16x32xf32>
    %24 = vector.shape_cast %23 : vector<1x16x32xf32> to vector<16x32xf32>
    %c4_14 = arith.constant 4 : index
    %25 = memref.load %arg1[%c4_14] : memref<12xf32, #tpu.memory_space<smem>>
    %26 = vector.broadcast %25 : f32 to vector<16x32xf32>
    %27 = arith.mulf %24, %26 : vector<16x32xf32>
    %28 = arith.addf %22, %27 : vector<16x32xf32>
    %c5 = arith.constant 5 : index
    %c0_15 = arith.constant 0 : index
    %c0_16 = arith.constant 0 : index
    %29 = vector.load %arg2[%c5, %c0_15, %c0_16] : memref<12x16x32xf32, #tpu.memory_space<vmem>>, vector<1x16x32xf32>
    %30 = vector.shape_cast %29 : vector<1x16x32xf32> to vector<16x32xf32>
    %c5_17 = arith.constant 5 : index
    %31 = memref.load %arg1[%c5_17] : memref<12xf32, #tpu.memory_space<smem>>
    %32 = vector.broadcast %31 : f32 to vector<16x32xf32>
    %33 = arith.mulf %30, %32 : vector<16x32xf32>
    %34 = arith.addf %28, %33 : vector<16x32xf32>
    %c6 = arith.constant 6 : index
    %c0_18 = arith.constant 0 : index
    %c0_19 = arith.constant 0 : index
    %35 = vector.load %arg2[%c6, %c0_18, %c0_19] : memref<12x16x32xf32, #tpu.memory_space<vmem>>, vector<1x16x32xf32>
    %36 = vector.shape_cast %35 : vector<1x16x32xf32> to vector<16x32xf32>
    %c6_20 = arith.constant 6 : index
    %37 = memref.load %arg1[%c6_20] : memref<12xf32, #tpu.memory_space<smem>>
    %38 = vector.broadcast %37 : f32 to vector<16x32xf32>
    %39 = arith.mulf %36, %38 : vector<16x32xf32>
    %40 = arith.addf %34, %39 : vector<16x32xf32>
    %c7 = arith.constant 7 : index
    %c0_21 = arith.constant 0 : index
    %c0_22 = arith.constant 0 : index
    %41 = vector.load %arg2[%c7, %c0_21, %c0_22] : memref<12x16x32xf32, #tpu.memory_space<vmem>>, vector<1x16x32xf32>
    %42 = vector.shape_cast %41 : vector<1x16x32xf32> to vector<16x32xf32>
    %c7_23 = arith.constant 7 : index
    %43 = memref.load %arg1[%c7_23] : memref<12xf32, #tpu.memory_space<smem>>
    %44 = vector.broadcast %43 : f32 to vector<16x32xf32>
    %45 = arith.mulf %42, %44 : vector<16x32xf32>
    %46 = arith.addf %40, %45 : vector<16x32xf32>
    %c8 = arith.constant 8 : index
    %c0_24 = arith.constant 0 : index
    %c0_25 = arith.constant 0 : index
    %47 = vector.load %arg2[%c8, %c0_24, %c0_25] : memref<12x16x32xf32, #tpu.memory_space<vmem>>, vector<1x16x32xf32>
    %48 = vector.shape_cast %47 : vector<1x16x32xf32> to vector<16x32xf32>
    %c8_26 = arith.constant 8 : index
    %49 = memref.load %arg1[%c8_26] : memref<12xf32, #tpu.memory_space<smem>>
    %50 = vector.broadcast %49 : f32 to vector<16x32xf32>
    %51 = arith.mulf %48, %50 : vector<16x32xf32>
    %52 = arith.addf %46, %51 : vector<16x32xf32>
    %c9 = arith.constant 9 : index
    %c0_27 = arith.constant 0 : index
    %c0_28 = arith.constant 0 : index
    %53 = vector.load %arg2[%c9, %c0_27, %c0_28] : memref<12x16x32xf32, #tpu.memory_space<vmem>>, vector<1x16x32xf32>
    %54 = vector.shape_cast %53 : vector<1x16x32xf32> to vector<16x32xf32>
    %c9_29 = arith.constant 9 : index
    %55 = memref.load %arg1[%c9_29] : memref<12xf32, #tpu.memory_space<smem>>
    %56 = vector.broadcast %55 : f32 to vector<16x32xf32>
    %57 = arith.mulf %54, %56 : vector<16x32xf32>
    %58 = arith.addf %52, %57 : vector<16x32xf32>
    %c10 = arith.constant 10 : index
    %c0_30 = arith.constant 0 : index
    %c0_31 = arith.constant 0 : index
    %59 = vector.load %arg2[%c10, %c0_30, %c0_31] : memref<12x16x32xf32, #tpu.memory_space<vmem>>, vector<1x16x32xf32>
    %60 = vector.shape_cast %59 : vector<1x16x32xf32> to vector<16x32xf32>
    %c10_32 = arith.constant 10 : index
    %61 = memref.load %arg1[%c10_32] : memref<12xf32, #tpu.memory_space<smem>>
    %62 = vector.broadcast %61 : f32 to vector<16x32xf32>
    %63 = arith.mulf %60, %62 : vector<16x32xf32>
    %64 = arith.addf %58, %63 : vector<16x32xf32>
    %c11 = arith.constant 11 : index
    %c0_33 = arith.constant 0 : index
    %c0_34 = arith.constant 0 : index
    %65 = vector.load %arg2[%c11, %c0_33, %c0_34] : memref<12x16x32xf32, #tpu.memory_space<vmem>>, vector<1x16x32xf32>
    %66 = vector.shape_cast %65 : vector<1x16x32xf32> to vector<16x32xf32>
    %c11_35 = arith.constant 11 : index
    %67 = memref.load %arg1[%c11_35] : memref<12xf32, #tpu.memory_space<smem>>
    %68 = vector.broadcast %67 : f32 to vector<16x32xf32>
    %69 = arith.mulf %66, %68 : vector<16x32xf32>
    %70 = arith.addf %64, %69 : vector<16x32xf32>
    %c0_36 = arith.constant 0 : index
    %c0_37 = arith.constant 0 : index
    %71 = vector.load %arg3[%c0_36, %c0_37] : memref<16x32xf32, #tpu.memory_space<vmem>>, vector<16x32xf32>
    tpu.vector_store %arg3[%c0_36, %c0_37], %70 {strides = array<i32>} : memref<16x32xf32, #tpu.memory_space<vmem>>, vector<16x32xf32>,
    return
  }
  func.func @transform_0(%arg0: i32) -> i32 {
    %c0_i32 = arith.constant 0 : i32
    %c0_i32_0 = arith.constant 0 : i32
    return %c0_i32 : i32
  }
  func.func @transform_1(%arg0: i32) -> (i32, i32, i32) {
    %c0_i32 = arith.constant 0 : i32
    %c0_i32_0 = arith.constant 0 : i32
    %c0_i32_1 = arith.constant 0 : i32
    return %c0_i32, %arg0, %c0_i32_0 : i32, i32, i32
  }
  func.func @transform_2(%arg0: i32) -> (i32, i32) {
    %c0_i32 = arith.constant 0 : i32
    %c0_i32_0 = arith.constant 0 : i32
    return %arg0, %c0_i32 : i32, i32
  }
}

</mosaic_0001>

<bundles_post_ra>
// kernel: tpu_custom_call.1
= control target key start
LH: loop header
LB: loop body
LE: loop exit
PB: predicated region body
PF: predicated region fallthrough
CT: control target
= control target key end

     0   :  { %7 = vsyncpa [#allocation5], 0  ;;  %s337_s0 = inlined_call_operand.hbm [shape: f32[12], index: 0, kind: input, shape index: {}]   ;;  %s338_s1 = inlined_call_operand.hbm [shape: f32[12,16,32], index: 1, kind: input, shape index: {}]   ;;  %s339_s2 = inlined_call_operand.hbm [shape: f32[16,32], index: 2, kind: output, shape index: {}]  }
   0x1   :  { %8 = vsyncpa [#allocation3], 0 }
   0x2   :  { %9 = vsyncpa [#allocation4], 0  ;;  %s179_s11 = scalar_lea.hbm %s337_s0, 16 }
   0x3   :  { %p180_p0 = scmp.ne.s32.totalorder %s337_s0, %s179_s11  ;;  %p183_p1 = scmp.lt.u32.totalorder %s179_s11, %s337_s0 }
   0x5   :  { %p185_p2 = pnand %p183_p1, %p180_p0 }
   0x7   :  { %188 = shalt.err (!%p185_p2)
}
   0x8   :  { %s239_s16 = smov [#allocation2]   ;;  %s240_s19 = smov [#allocation6]  }
   0x9   :  { %17 = dma.hbm_to_smem %s337_s0, 16, %s239_s16, [#allocation5]  }
   0xa   :  { %s23_s20 = sshll.u32 %s240_s19, 4  ;;  %s189_s23 = scalar_lea.hbm %s338_s1, 3072  ;;  %s24_s20 = int_to_ptr.vmem [resolvable:$true] %s23_s20 }
   0xb   :  { %p190_p3 = scmp.ne.s32.totalorder %s338_s1, %s189_s23  ;;  %p193_p4 = scmp.lt.u32.totalorder %s189_s23, %s338_s1 }
   0xd   :  { %p195_p5 = pnand %p193_p4, %p190_p3 }
   0xf   :  { %198 = shalt.err (!%p195_p5)
}
  0x10   :  { %s199_s28 = scalar_lea.vmem %s24_s20, 3072  ;;  %p204_p7 = scmp.lt.s32.totalorder %s24_s20, %s24_s20 }
  0x11   :  { %p200_p6 = scmp.ne.s32.totalorder %s24_s20, %s199_s28  ;;  %p205_p8 = scmp.lt.s32.totalorder %s199_s28, %s199_s28 }
  0x13   :  { %p206_p9 = por %p205_p8, %p204_p7 }
  0x15   :  { %p207_p10 = pnand %p206_p9, %p200_p6 }
  0x17   :  { %210 = shalt.err (!%p207_p10)
}
  0x18   :  { %s241_s0 = smov 128   ;;  %s242_s29 = smov 8  }
  0x19   :  { %29 = dma.hbm_to_vmem [thread:$0]  %s338_s1, 3072, %s24_s20, [#allocation3], %s241_s0, %s241_s0, %s242_s29  }
  0x1a   :  { %233 = dma.done.wait [#allocation5], 16  }
  0x1b   :  { %234 = vsyncadd [#allocation5], 4294967280 }
  0x1c   :  { %235 = dma.done.wait [#allocation3], 3072  }
  0x1d   :  { %236 = vsyncadd [#allocation3], 4294964224 }
  0x1e   :  { %36 = sfence }
  0x1f   :  { %s286_s4 = sld [smem:[#allocation2]]  ;;  %s288_s5 = sld [smem:[#allocation2 + $0x1]]  ;;  %v37_v0 = vld [vmem:[#allocation6] sm:$0xff]  ;;  %v44_v1 = vld [vmem:[#allocation6 + $0x10] sm:$0xff]  ;;  %v38_v15 = vld [vmem:[#allocation6 + $0x8] sm:$0xff]  ;;  %vm142_vm0 = vcmask 261120  }
  0x20   :  { %s290_s6 = sld [smem:[#allocation2 + $0x2]]  ;;  %s292_s7 = sld [smem:[#allocation2 + $0x3]]  ;;  %v53_v2 = vld [vmem:[#allocation6 + $0x20] sm:$0xff]  ;;  %v62_v5 = vld [vmem:[#allocation6 + $0x30] sm:$0xff]  ;;  %v45_v16 = vld [vmem:[#allocation6 + $0x18] sm:$0xff] }
  0x21   :  { %s294_s8 = sld [smem:[#allocation2 + $0x4]]  ;;  %s296_s1 = sld [smem:[#allocation2 + $0x5]]  ;;  %v71_v11 = vld [vmem:[#allocation6 + $0x40] sm:$0xff]  ;;  %v80_v17 = vld [vmem:[#allocation6 + $0x50] sm:$0xff]  ;;  %v54_v19 = vld [vmem:[#allocation6 + $0x28] sm:$0xff] }
  0x22   :  { %s298_s9 = sld [smem:[#allocation2 + $0x6]]  ;;  %s302_s10 = sld [smem:[#allocation2 + $0x7]]  ;;  %v63_v22 = vld [vmem:[#allocation6 + $0x38] sm:$0xff]  ;;  %v89_v23 = vld [vmem:[#allocation6 + $0x60] sm:$0xff]  ;;  %v72_v30 = vld [vmem:[#allocation6 + $0x48] sm:$0xff] }
  0x23   :  { %s307_s11 = sld [smem:[#allocation2 + $0x8]]  ;;  %s310_s12 = sld [smem:[#allocation2 + $0x9]]  ;;  %v98_v31 = vld [vmem:[#allocation6 + $0x70] sm:$0xff]  ;;  %v81_v37 = vld [vmem:[#allocation6 + $0x58] sm:$0xff]  ;;  %v107_v38 = vld [vmem:[#allocation6 + $0x80] sm:$0xff] }
  0x24   :  { %s313_s13 = sld [smem:[#allocation2 + $0xa]]  ;;  %s316_s14 = sld [smem:[#allocation2 + $0xb]]  ;;  %v90_v44 = vld [vmem:[#allocation6 + $0x68] sm:$0xff]  ;;  %v116_v45 = vld [vmem:[#allocation6 + $0x90] sm:$0xff]  ;;  %v99_v51 = vld [vmem:[#allocation6 + $0x78] sm:$0xff] }
  0x25   :  { %v40_v3 = vstv %s286_s4  ;;  %v47_v4 = vstv %s288_s5  ;;  %v125_v52 = vld [vmem:[#allocation6 + $0xa0] sm:$0xff]  ;;  %v108_v58 = vld [vmem:[#allocation6 + $0x88] sm:$0xff]  ;;  %v134_v59 = vld [vmem:[#allocation6 + $0xb0] sm:$0xff]  ;;  %s243_s15 = smov [#allocation7]  }
  0x26   :  { %v41_v6 = vmul.f32 %v40_v3, %v37_v0  ;;  %v48_v7 = vmul.f32 %v47_v4, %v44_v1  ;;  %v56_v8 = vstv %s290_s6  ;;  %v65_v9 = vstv %s292_s7  ;;  %v117_v1 = vld [vmem:[#allocation6 + $0x98] sm:$0xff]  ;;  %s150_s16 = sshll.u32 %s243_s15, 4  ;;  %s151_s16 = int_to_ptr.vmem [resolvable:$true] %s150_s16 }
  0x27   :  { %v57_v10 = vmul.f32 %v56_v8, %v53_v2  ;;  %v74_v12 = vstv %s294_s8  ;;  %v66_v14 = vmul.f32 %v65_v9, %v62_v5  ;;  %v83_v18 = vstv %s296_s1  ;;  %s211_s17 = scalar_lea.vmem %s151_s16, 256  ;;  %p216_p12 = scmp.lt.s32.totalorder %s151_s16, %s151_s16 }
  0x28   :  { %v50_v13 = vadd.f32 %v48_v7, %v41_v6  ;;  %v75_v21 = vmul.f32 %v74_v12, %v71_v11  ;;  %v92_v24 = vstv %s298_s9  ;;  %v42_v25 = vmul.f32 %v40_v3, %v38_v15  ;;  %v126_v6 = vld [vmem:[#allocation6 + $0xa8] sm:$0xff]  ;;  %p212_p11 = scmp.ne.s32.totalorder %s151_s16, %s211_s17  ;;  %p217_p13 = scmp.lt.s32.totalorder %s211_s17, %s211_s17 }
  0x29   :  { %v49_v26 = vmul.f32 %v47_v4, %v45_v16  ;;  %v84_v28 = vmul.f32 %v83_v18, %v80_v17  ;;  %v58_v29 = vmul.f32 %v56_v8, %v54_v19  ;;  %v101_v32 = vstv %s302_s10 }
  0x2a   :  { %v59_v20 = vadd.f32 %v57_v10, %v50_v13  ;;  %v67_v34 = vmul.f32 %v65_v9, %v63_v22  ;;  %v93_v36 = vmul.f32 %v92_v24, %v89_v23  ;;  %v110_v39 = vstv %s307_s11  ;;  %v135_v10 = vld [vmem:[#allocation6 + $0xb8] sm:$0xff]  ;;  %p218_p0 = por %p217_p13, %p216_p12 }
  0x2b   :  { %v51_v33 = vadd.f32 %v49_v26, %v42_v25  ;;  %v76_v41 = vmul.f32 %v74_v12, %v72_v30  ;;  %v102_v43 = vmul.f32 %v101_v32, %v98_v31  ;;  %v119_v46 = vstv %s310_s12 }
  0x2c   :  { %v68_v27 = vadd.f32 %v66_v14, %v59_v20  ;;  %v85_v48 = vmul.f32 %v83_v18, %v81_v37  ;;  %v111_v50 = vmul.f32 %v110_v39, %v107_v38  ;;  %v128_v53 = vstv %s313_s13  ;;  %p219_p1 = pnand %p218_p0, %p212_p11 }
  0x2d   :  { %v60_v40 = vadd.f32 %v58_v29, %v51_v33  ;;  %v94_v55 = vmul.f32 %v92_v24, %v90_v44  ;;  %v120_v57 = vmul.f32 %v119_v46, %v116_v45  ;;  %v137_v60 = vstv %s316_s14 }
  0x2e   :  { %v77_v35 = vadd.f32 %v75_v21, %v68_v27  ;;  %v103_v62 = vmul.f32 %v101_v32, %v99_v51  ;;  %v129_v0 = vmul.f32 %v128_v53, %v125_v52  ;;  %v112_v3 = vmul.f32 %v110_v39, %v108_v58 }
  0x2f   :  { %v69_v47 = vadd.f32 %v67_v34, %v60_v40  ;;  %v138_v5 = vmul.f32 %v137_v60, %v134_v59  ;;  %v121_v8 = vmul.f32 %v119_v46, %v117_v1  ;;  %v130_v12 = vmul.f32 %v128_v53, %v126_v6 }
  0x30   :  { %v86_v42 = vadd.f32 %v84_v28, %v77_v35  ;;  %v139_v15 = vmul.f32 %v137_v60, %v135_v10 }
  0x31   :  { %v78_v54 = vadd.f32 %v76_v41, %v69_v47 }
  0x32   :  { %v95_v49 = vadd.f32 %v93_v36, %v86_v42 }
  0x33   :  { %v87_v61 = vadd.f32 %v85_v48, %v78_v54 }
  0x34   :  { %v104_v56 = vadd.f32 %v102_v43, %v95_v49 }
  0x35   :  { %v96_v2 = vadd.f32 %v94_v55, %v87_v61 }
  0x36   :  { %v113_v63 = vadd.f32 %v111_v50, %v104_v56 }
  0x37   :  { %v105_v7 = vadd.f32 %v103_v62, %v96_v2 }
  0x38   :  { %v122_v4 = vadd.f32 %v120_v57, %v113_v63 }
  0x39   :  { %v114_v11 = vadd.f32 %v112_v3, %v105_v7 }
  0x3a   :  { %v131_v9 = vadd.f32 %v129_v0, %v122_v4 }
  0x3b   :  { %v123_v14 = vadd.f32 %v121_v8, %v114_v11 }
  0x3c   :  { %v140_v13 = vadd.f32 %v138_v5, %v131_v9 }
  0x3d   :  { %v132_v16 = vadd.f32 %v130_v12, %v123_v14 }
  0x3e   :  { %143 = vst.msk [vmem:[#allocation7] sm:$0xff] %vm142_vm0, %v140_v13 }
  0x3f   :  { %v141_v17 = vadd.f32 %v139_v15, %v132_v16 }
  0x41   :  { %144 = vst.msk [vmem:[#allocation7 + $0x8] sm:$0xff] %vm142_vm0, %v141_v17 }
  0x42   :  { %222 = shalt.err (!%p219_p1)
}
  0x43   :  { %s223_s20 = scalar_lea.hbm %s339_s2, 256 }
  0x44   :  { %p224_p2 = scmp.ne.s32.totalorder %s339_s2, %s223_s20  ;;  %p227_p3 = scmp.lt.u32.totalorder %s223_s20, %s339_s2 }
  0x46   :  { %p229_p4 = pnand %p227_p3, %p224_p2 }
  0x48   :  { %232 = shalt.err (!%p229_p4)
}
  0x49   :  { %156 = dma.vmem_to_hbm [thread:$0]  %s151_s16, 256, %s339_s2, [#allocation4], %s241_s0, %s241_s0, %s242_s29  }
  0x4a   :  { %237 = dma.done.wait [#allocation4], 256  }
  0x4b   :  { %238 = vsyncadd [#allocation4], 4294967040 }
  0x4c   :  { %160 = vsyncpa [#allocation3], 1 }
  0x4d   :  { %161 = vsyncpa [#allocation4], 1 }
  0x4e   :  { %162 = vsyncpa [#allocation5], 1 }

</bundles_post_ra>
